<compile_context>
chip_gen: v5e
topology: v5e:2x2
jax: 0.10.0
libtpu: 0.0.40
codegen_flags: <defaults>
</compile_context>

<pallas_src>
import jax
import jax.numpy as jnp
from jax.experimental import pallas as pl
from jax.experimental.pallas import tpu as pltpu


def _round_up(x: int, m: int) -> int:
    return ((x + m - 1) // m) * m


def _model_kernel(wt_ref, b_ref, x_ref, o_ref):
    # wt_ref: VMEM (in_f=8, out_f=3) f32  == weight.T (resident, fetched once)
    # b_ref : VMEM (out_f=3, 1)      f32  (resident)
    # x_ref : VMEM (in_f=8, TB)      f32  lane-dense activation block
    # o_ref : VMEM (out_f=3, TB)     f32  lane-dense output block
    x = x_ref[...]                       # single full-tile load
    wt = wt_ref[...]                     # (8, 3)
    out_f = wt.shape[1]

    # Row r = sum_k weight[r, k] * x[k, :]
    # Full-occupancy (8, TB) VPU multiply + XLU sublane reduce per row.
    rows = [
        jnp.sum(x * wt[:, r:r + 1], axis=0, keepdims=True)   # (1, TB)
        for r in range(out_f)
    ]
    y = jnp.concatenate(rows, axis=0) + b_ref[...]            # (3, TB) + (3, 1)

    # One fused sigmoid over the whole block, one unmasked store.
    o_ref[...] = (1.0 / (1.0 + jnp.exp(-y))).astype(o_ref.dtype)


def model_forward(x1, weight, bias, *, tb=65536):
    """sigmoid(Linear(x1.t())) for x1 of shape (in_features, batch).

    weight: (out_features, in_features), bias: (out_features,).
    Returns (batch, out_features), matching nn.Linear(8, 3) + sigmoid.
    """
    in_f, batch = x1.shape
    out_f = weight.shape[0]

    # Pad only to the next lane multiple (<=127 extra columns of traffic).
    padded = _round_up(batch, 128)
    x1p = x1 if padded == batch else jnp.pad(x1, ((0, 0), (0, padded - batch)))

    # Tile selection: big blocks (default 2 MiB input) to hide per-step
    # overhead, but capped so the parallel grid keeps >= 2 blocks whenever
    # possible (v7x megacore).  Ragged last block is handled by Pallas.
    tb_eff = min(tb, padded)
    if padded > 128:
        tb_eff = min(tb_eff, _round_up(pl.cdiv(padded, 2), 128))
    tb_eff = max(128, tb_eff)
    nb = pl.cdiv(padded, tb_eff)

    w_t = weight.T                  # (in_f, out_f): column r = row r's weights
    b2 = bias.reshape(out_f, 1)     # (out_f, 1) for one broadcast bias add

    cost = pl.CostEstimate(
        flops=2 * padded * in_f * out_f,
        transcendentals=padded * out_f,
        bytes_accessed=4 * (padded * in_f + padded * out_f + in_f * out_f + out_f),
    )

    out_fb = pl.pallas_call(
        _model_kernel,
        out_shape=jax.ShapeDtypeStruct((out_f, padded), jnp.float32),
        grid=(nb,),
        in_specs=[
            # Tiny weight.T / bias blocks: full-array VMEM, same block every
            # step => fetched once and kept resident.
            pl.BlockSpec((in_f, out_f), lambda i: (0, 0)),
            pl.BlockSpec((out_f, 1), lambda i: (0, 0)),
            # Batch-tiled lane-dense activations (double-buffered by Pallas).
            pl.BlockSpec((in_f, tb_eff), lambda i: (0, i)),
        ],
        out_specs=pl.BlockSpec((out_f, tb_eff), lambda i: (0, i)),
        compiler_params=pltpu.CompilerParams(
            dimension_semantics=("parallel",)),
        cost_estimate=cost,
    )(w_t, b2, x1p)

    # nn.Linear layout (batch, out_features).  The slice + transpose stay in
    # XLA outside the kernel; drop the .T if the consumer accepts (out_f, B).
    return out_fb[:, :batch].T


if __name__ == "__main__":
    key = jax.random.PRNGKey(0)
    k_x, k_w, k_b, k_x2 = jax.random.split(key, 4)

    in_features, out_features, batch = 8, 3, 4

    # Deterministic nn.Linear-style init (uniform bound 1/sqrt(in_features)).
    bound = 1.0 / (in_features ** 0.5)
    weight = jax.random.uniform(k_w, (out_features, in_features),
                                jnp.float32, -bound, bound)
    bias = jax.random.uniform(k_b, (out_features,), jnp.float32, -bound, bound)

    def reference(x):
        # Exact-f32 elementwise reference (avoids MXU default-precision dot).
        y = (x.T[:, :, None] * weight.T[None, :, :]).sum(axis=1) + bias
        return jax.nn.sigmoid(y)

    # Primary small shape implied by the module: x1 is (in_features, batch)
    # pre-transpose so that x1.t() feeds Linear(8, 3).
    x1 = jax.random.normal(k_x, (in_features, batch), jnp.float32)
    out = jax.block_until_ready(model_forward(x1, weight, bias))
    assert out.shape == (batch, out_features)
    assert jnp.allclose(out, reference(x1), atol=1e-5, rtol=1e-5)

    # Second call exercises padding + a 2-block grid (both TensorCores on v7x).
    x1b = jax.random.normal(k_x2, (in_features, 1000), jnp.float32)
    outb = jax.block_until_ready(model_forward(x1b, weight, bias))
    assert outb.shape == (1000, out_features)
    assert jnp.allclose(outb, reference(x1b), atol=1e-5, rtol=1e-5)

    print("KERNEL_OK")
</pallas_src>

<mosaic_0001>
module attributes {stable_mosaic.version = 11 : i64} {
  func.func @_model_kernel(%arg0: i32, %arg1: memref<8x3xf32, #tpu.memory_space<vmem>>, %arg2: memref<3x1xf32, #tpu.memory_space<vmem>>, %arg3: memref<8x128xf32, #tpu.memory_space<vmem>>, %arg4: memref<3x128xf32, #tpu.memory_space<vmem>>) attributes {dimension_semantics = [#tpu.dimension_semantics<parallel>], iteration_bounds = array<i64: 1>, scalar_prefetch = 0 : i64, scratch_operands = 0 : i64, tpu.core_type = #tpu.core_type<tc>, window_params = [{pipeline_mode = #tpu.pipeline_mode<synchronous>, transform_indices = @transform_0, window_bounds = array<i64: 8, 3>}, {pipeline_mode = #tpu.pipeline_mode<synchronous>, transform_indices = @transform_1, window_bounds = array<i64: 3, 1>}, {transform_indices = @transform_2, window_bounds = array<i64: 8, 128>}, {transform_indices = @transform_3, window_bounds = array<i64: 3, 128>}]} {
    %c0 = arith.constant 0 : index
    %c0_0 = arith.constant 0 : index
    %0 = vector.load %arg3[%c0, %c0_0] : memref<8x128xf32, #tpu.memory_space<vmem>>, vector<8x128xf32>
    %c0_1 = arith.constant 0 : index
    %c0_2 = arith.constant 0 : index
    %1 = vector.load %arg1[%c0_1, %c0_2] : memref<8x3xf32, #tpu.memory_space<vmem>>, vector<8x3xf32>
    %2 = vector.extract_strided_slice %1 {offsets = [0, 0], sizes = [8, 1], strides = [1, 1]} : vector<8x3xf32> to vector<8x1xf32>
    %3 = vector.broadcast %2 : vector<8x1xf32> to vector<8x128xf32>
    %4 = arith.mulf %0, %3 : vector<8x128xf32>
    %cst = arith.constant dense<0.000000e+00> : vector<128xf32>
    %5 = vector.multi_reduction <add>, %4, %cst [0] : vector<8x128xf32> to vector<128xf32>
    %6 = vector.shape_cast %5 : vector<128xf32> to vector<1x128xf32>
    %7 = vector.extract_strided_slice %1 {offsets = [0, 1], sizes = [8, 1], strides = [1, 1]} : vector<8x3xf32> to vector<8x1xf32>
    %8 = vector.broadcast %7 : vector<8x1xf32> to vector<8x128xf32>
    %9 = arith.mulf %0, %8 : vector<8x128xf32>
    %cst_3 = arith.constant dense<0.000000e+00> : vector<128xf32>
    %10 = vector.multi_reduction <add>, %9, %cst_3 [0] : vector<8x128xf32> to vector<128xf32>
    %11 = vector.shape_cast %10 : vector<128xf32> to vector<1x128xf32>
    %12 = vector.extract_strided_slice %1 {offsets = [0, 2], sizes = [8, 1], strides = [1, 1]} : vector<8x3xf32> to vector<8x1xf32>
    %13 = vector.broadcast %12 : vector<8x1xf32> to vector<8x128xf32>
    %14 = arith.mulf %0, %13 : vector<8x128xf32>
    %cst_4 = arith.constant dense<0.000000e+00> : vector<128xf32>
    %15 = vector.multi_reduction <add>, %14, %cst_4 [0] : vector<8x128xf32> to vector<128xf32>
    %16 = vector.shape_cast %15 : vector<128xf32> to vector<1x128xf32>
    %17 = tpu.concatenate %6, %11, %16 in 0 : vector<1x128xf32>, vector<1x128xf32>, vector<1x128xf32> -> vector<3x128xf32>
    %c0_5 = arith.constant 0 : index
    %c0_6 = arith.constant 0 : index
    %18 = vector.load %arg2[%c0_5, %c0_6] : memref<3x1xf32, #tpu.memory_space<vmem>>, vector<3x1xf32>
    %19 = vector.broadcast %18 : vector<3x1xf32> to vector<3x128xf32>
    %20 = arith.addf %17, %19 : vector<3x128xf32>
    %cst_7 = arith.constant 0.000000e+00 : f32
    %21 = vector.broadcast %cst_7 : f32 to vector<3x128xf32>
    %22 = arith.subf %21, %20 : vector<3x128xf32>
    %23 = math.exp %22 : vector<3x128xf32>
    %cst_8 = arith.constant 1.000000e+00 : f32
    %24 = vector.broadcast %cst_8 : f32 to vector<3x128xf32>
    %25 = arith.addf %24, %23 : vector<3x128xf32>
    %cst_9 = arith.constant 1.000000e+00 : f32
    %26 = vector.broadcast %cst_9 : f32 to vector<3x128xf32>
    %27 = arith.divf %26, %25 : vector<3x128xf32>
    %c0_10 = arith.constant 0 : index
    %c0_11 = arith.constant 0 : index
    %28 = vector.load %arg4[%c0_10, %c0_11] : memref<3x128xf32, #tpu.memory_space<vmem>>, vector<3x128xf32>
    tpu.vector_store %arg4[%c0_10, %c0_11], %27 {strides = array<i32>} : memref<3x128xf32, #tpu.memory_space<vmem>>, vector<3x128xf32>,
    return
  }
  func.func @transform_0(%arg0: i32) -> (i32, i32) {
    %c0_i32 = arith.constant 0 : i32
    %c0_i32_0 = arith.constant 0 : i32
    %c0_i32_1 = arith.constant 0 : i32
    return %c0_i32, %c0_i32_0 : i32, i32
  }
  func.func @transform_1(%arg0: i32) -> (i32, i32) {
    %c0_i32 = arith.constant 0 : i32
    %c0_i32_0 = arith.constant 0 : i32
    %c0_i32_1 = arith.constant 0 : i32
    return %c0_i32, %c0_i32_0 : i32, i32
  }
  func.func @transform_2(%arg0: i32) -> (i32, i32) {
    %c0_i32 = arith.constant 0 : i32
    %c0_i32_0 = arith.constant 0 : i32
    return %c0_i32, %arg0 : i32, i32
  }
  func.func @transform_3(%arg0: i32) -> (i32, i32) {
    %c0_i32 = arith.constant 0 : i32
    %c0_i32_0 = arith.constant 0 : i32
    return %c0_i32, %arg0 : i32, i32
  }
}

</mosaic_0001>

<bundles_post_ra>
// kernel: tpu_custom_call.1
= control target key start
LH: loop header
LB: loop body
LE: loop exit
PB: predicated region body
PF: predicated region fallthrough
CT: control target
= control target key end

     0   :  { %v137_v1 = vmov 0   ;;  %v138_v2 = vmov 2   ;;  %s173_s0 = inlined_call_operand.vmem [shape: f32[8,3], index: 0, kind: input, shape index: {}]   ;;  %s174_s1 = inlined_call_operand.vmem [shape: f32[3,1], index: 1, kind: input, shape index: {}]   ;;  %s175_s2 = inlined_call_operand.vmem [shape: f32[8,128], index: 2, kind: input, shape index: {}]   ;;  %s176_s3 = inlined_call_operand.hbm [shape: f32[3,128], index: 3, kind: output, shape index: {}]  }
   0x1   :  { %v16_v0 = vld [vmem:[%s173_s0] sm:$0xff]  ;;  %102 = vset.pattern.permute.xlu0 %v137_v1  ;;  %104 = vset.pattern.permute.xlu1 %v138_v2 }
   0x2   :  { %8 = vsyncpa [#allocation3], 0  ;;  %19 = vperm.xlu0 %102, %v16_v0   ;;  %41 = vperm.xlu1 %104, %v16_v0   ;;  %v55_v3 = vld [vmem:[%s174_s1] sm:$0x7]  ;;  %v139_v4 = vmov 1   ;;  %vm51_vm0 = vcmask 1040384  }
   0x3   :  { %v15_v5 = vld [vmem:[%s175_s2] sm:$0xff]  ;;  %vm53_vm1 = vcmask 1041408   ;;  %s140_s0 = smov [#allocation2]   ;;  %s89_s19 = sshll.u32 %s176_s3, 4  ;;  %s90_s19 = int_to_ptr.hbm [resolvable:$true] %s89_s19 }
   0x4   :  { %s87_s1 = sshll.u32 %s140_s0, 4  ;;  %s88_s1 = int_to_ptr.vmem [resolvable:$true] %s87_s1 }
   0xa   :  { %103 = vset.pattern.permute.xlu0 %v139_v4  ;;  %105 = vset.pattern.permute.xlu1 %v137_v1 }
   0xb   :  { %30 = vperm.xlu0 %103, %v16_v0   ;;  %58 = vperm.xlu1 %105, %v55_v3  }
  0x13   :  { %106 = vset.pattern.permute.xlu0 %v137_v1 }
  0x74   :  { %v20_v6 = vpop.permute.xlu0 %19  ;;  %v42_v7 = vpop.permute.xlu1 %41 }
  0x75   :  { %v22_v8 = vmul.f32 %v20_v6, %v15_v5  ;;  %v44_v9 = vmul.f32 %v42_v7, %v15_v5 }
  0x77   :  { %v23_v10 = vrot.slane %v22_v8, 4  ;;  %v45_v11 = vrot.slane %v44_v9, 4 }
  0x79   :  { %v24_v12 = vadd.f32 %v23_v10, %v22_v8  ;;  %v46_v13 = vadd.f32 %v45_v11, %v44_v9 }
  0x7b   :  { %v25_v15 = vrot.slane %v24_v12, 2  ;;  %v47_v17 = vrot.slane %v46_v13, 2 }
  0x7d   :  { %v31_v14 = vpop.permute.xlu0 %30  ;;  %v26_v19 = vadd.f32 %v25_v15, %v24_v12  ;;  %v48_v21 = vadd.f32 %v47_v17, %v46_v13  ;;  %v59_v29 = vpop.permute.xlu1 %58 }
  0x7e   :  { %v33_v16 = vmul.f32 %v31_v14, %v15_v5 }
  0x7f   :  { %v27_v23 = vrot.slane %v26_v19, 1  ;;  %v49_v25 = vrot.slane %v48_v21, 1 }
  0x80   :  { %v34_v18 = vrot.slane %v33_v16, 4 }
  0x81   :  { %v28_v27 = vadd.f32 %v27_v23, %v26_v19  ;;  %v50_v30 = vadd.f32 %v49_v25, %v48_v21 }
  0x82   :  { %v35_v20 = vadd.f32 %v34_v18, %v33_v16 }
  0x84   :  { %v36_v22 = vrot.slane %v35_v20, 2 }
  0x86   :  { %v37_v24 = vadd.f32 %v36_v22, %v35_v20 }
  0x88   :  { %v38_v26 = vrot.slane %v37_v24, 1 }
  0x8a   :  { %v39_v28 = vadd.f32 %v38_v26, %v37_v24 }
  0x8c   :  { %v52_v31 = vsel %vm51_vm0, %v28_v27, %v39_v28 }
  0x8d   :  { %v54_v32 = vsel %vm53_vm1, %v52_v31, %v50_v30 }
  0x8e   :  { %v61_v33 = vadd.f32 %v59_v29, %v54_v32 }
  0x90   :  { %v62_v34 = vsub.f32 0.0, %v61_v33 }
  0x92   :  { %v63_v35 = vmul.f32 1.442695, %v62_v34 }
  0x94   :  { %107 = vpow2.f32 %v63_v35 }
  0x9a   :  { %v108_v36 = vpop.eup %107 }
  0x9b   :  { %v65_v37 = vadd.f32 1.0, %v108_v36 }
  0x9d   :  { %109 = vrcp.f32 %v65_v37  ;;  %v77_v41 = vand.u32 2147483648, %v65_v37  ;;  %v75_v43 = vand.u32 2147483647, %v65_v37  ;;  %vm71_vm3 = vweird.f32 %v65_v37 }
  0x9f   :  { %v78_v45 = vor.u32 1.1754944e-38, %v77_v41  ;;  %vm76_vm5 = vcmp.eq.f32.partialorder %v75_v43, 8.507059e+37 }
  0xa3   :  { %v110_v38 = vpop.eup %109 }
  0xa4   :  { %v67_v39 = vmul.f32 %v110_v38, %v65_v37  ;;  %vm72_vm2 = vweird.f32 %v110_v38 }
  0xa5   :  { %vm73_vm4 = vmor %vm71_vm3, %vm72_vm2 }
  0xa6   :  { %v68_v40 = vsub.f32 1.0, %v67_v39 }
  0xa8   :  { %v69_v42 = vmul.f32 %v110_v38, %v68_v40 }
  0xaa   :  { %v70_v44 = vadd.f32 %v110_v38, %v69_v42 }
  0xac   :  { %v74_v46 = vsel %vm73_vm4, %v110_v38, %v70_v44 }
  0xad   :  { %v79_v47 = vsel %vm76_vm5, %v78_v45, %v74_v46 }
  0xae   :  { %81 = vst [vmem:[#allocation2] sm:$0x7] %v79_v47 }
  0xaf   :  { %92 = dma.vmem_to_hbm [thread:$0]  %s88_s1, 64, %s90_s19, [#allocation3]  }
  0xb0   :  { %135 = dma.done.wait [#allocation3], 64  }
  0xb1   :  { %136 = vsyncadd [#allocation3], 4294967232 }
  0xb2   :  { %97 = vsyncpa [#allocation3], 1 }

</bundles_post_ra>
